<compile_context>
chip_gen: v6e
topology: v6e:2x2x1
jax: 0.10.0
libtpu: 0.0.40
codegen_flags: <defaults>
</compile_context>

<pallas_src>
import functools
import math

import jax
import jax.numpy as jnp
from jax import lax
from jax.experimental import pallas as pl
from jax.experimental.pallas import tpu as pltpu

THRESHOLD = 0.95
LAMBDA_U = 1.0


def _craig_tile_kernel(weak_ref, strong_ref, label_ref, y_ref, out_ref,
                       *, n_total, logit_thr):
    """One row tile -> lane-dense partial sums [sum ce_s, sum mask, sum ce_u]."""
    tn, c = label_ref.shape
    f32 = jnp.float32
    i = pl.program_id(0)

    # Valid-row mask for the (possibly padded) last tile.  Padded rows may hold
    # arbitrary pad data (even Inf/NaN); keep the where-select form so nothing
    # from an invalid row can propagate into the partial sums.
    row_ids = i * tn + lax.broadcasted_iota(jnp.int32, (tn, 1), 0)
    valid = row_ids < n_total                                   # (tn, 1) bool

    # Class-index grid: target gather (one-hot select) and argmax tie-break.
    cls = lax.broadcasted_iota(jnp.int32, (tn, c), 1)

    # ---- supervised CE partial: sum_i [ logsumexp(label_i) - label_i[y_i] ]
    lbl = label_ref[...].astype(f32)
    m_l = jnp.max(lbl, axis=-1, keepdims=True)
    lse_l = m_l + jnp.log(jnp.sum(jnp.exp(lbl - m_l), axis=-1, keepdims=True))
    y = y_ref[...]                                              # (tn, 1) int32
    tgt_l = jnp.sum(jnp.where(cls == y, lbl, 0.0), axis=-1, keepdims=True)
    part_s = jnp.sum(jnp.where(valid, lse_l - tgt_l, 0.0))

    # ---- pseudo labels: sigmoid is monotonic, so work on raw weak logits;
    #      threshold compared in logit space (precomputed logit_thr).
    wk = weak_ref[...].astype(f32)
    max_wk = jnp.max(wk, axis=-1, keepdims=True)
    # first index attaining the maximum (same tie-break as argmax)
    max_idx = jnp.min(jnp.where(wk == max_wk, cls, c),
                      axis=-1, keepdims=True)
    mask = (max_wk >= logit_thr).astype(f32)
    part_mask = jnp.sum(jnp.where(valid, mask, 0.0))

    # ---- unsupervised CE vs pseudo labels, partial sum
    st = strong_ref[...].astype(f32)
    m_s = jnp.max(st, axis=-1, keepdims=True)
    lse_s = m_s + jnp.log(jnp.sum(jnp.exp(st - m_s), axis=-1, keepdims=True))
    tgt_s = jnp.sum(jnp.where(cls == max_idx, st, 0.0), axis=-1, keepdims=True)
    part_u = jnp.sum(jnp.where(valid, lse_s - tgt_s, 0.0))

    # Lane-dense (8,128) partial tile: sublane 0 -> part_s, 1 -> mask sum,
    # 2 -> part_u (values replicated across lanes; wrapper reads lane 0).
    row = lax.broadcasted_iota(jnp.int32, (8, 128), 0)
    out_ref[0] = jnp.where(row == 0, part_s,
                 jnp.where(row == 1, part_mask,
                 jnp.where(row == 2, part_u, 0.0)))


def _round_up(x, m):
    return -(-x // m) * m


def _vmem_budget_bytes():
    """Generation-aware VMEM budget for the resident working set."""
    try:
        cap = int(pltpu.get_tpu_info().vmem_capacity_bytes)
    except Exception:
        cap = 0
    if cap >= (100 << 20):      # v5e / v6e: 128 MiB physical VMEM per core
        return 96 << 20
    return 40 << 20             # v7x (64 MiB per TC) or unknown: stay safe


def _choose_tile_rows(n, row_bytes, budget):
    """Row-tile size: as large as the VMEM budget allows, >=2 tiles if n>8."""
    if n <= 8:
        return n                            # block == full array dims
    usable = max(budget - (2 << 20), 1 << 20)   # slack for output blocks etc.
    cap = max(int(usable // row_bytes), 8) // 8 * 8
    cap = min(max(cap, 8), 2048)            # roofline gains saturate ~1-2K rows
    # at least two tiles so both v7x TensorCores get work
    tn = min(cap, _round_up(-(-n // 2), 8))
    # prefer an even tile count to balance the per-core HBM streams
    nt = -(-n // tn)
    if nt > 2 and nt % 2 == 1:
        tn2 = _round_up(-(-n // (nt + 1)), 8)
        if tn2 >= 8 and (-(-n // tn2)) % 2 == 0:
            tn = tn2
    return tn


def craig_loss(weak, strong, label, y_label,
               threshold=THRESHOLD, lambda_u=LAMBDA_U):
    n, c = label.shape
    in_dtypes = (weak.dtype, strong.dtype, label.dtype)

    # Resident VMEM per tile row:
    #   * 3 streamed inputs, double-buffered, at their wire dtype
    #   * (tn, 1) int32 y block padded to (8,128) tiles, double-buffered
    #   * ~8 live (tn, C)-shaped f32/i32 temporaries inside the kernel
    row_bytes = (2 * sum(c * jnp.dtype(d).itemsize for d in in_dtypes)
                 + 2 * 512
                 + 8 * c * 4)
    budget = _vmem_budget_bytes()
    tn = _choose_tile_rows(n, row_bytes, budget)
    num_tiles = pl.cdiv(n, tn)

    y2d = y_label.astype(jnp.int32).reshape(n, 1)
    logit_thr = float(math.log(threshold / (1.0 - threshold)))

    kern = functools.partial(_craig_tile_kernel,
                             n_total=n, logit_thr=logit_thr)

    # Honest cost hint: per-input itemsizes, realistic elementwise/reduction
    # flop count, two transcendentals (exp/log-class work) per element.
    bytes_accessed = (sum(n * c * jnp.dtype(d).itemsize for d in in_dtypes)
                      + n * 4 + num_tiles * 8 * 128 * 4)
    cost = pl.CostEstimate(flops=45 * n * c,
                           transcendentals=2 * n * c,
                           bytes_accessed=int(bytes_accessed))

    partials = pl.pallas_call(
        kern,
        out_shape=jax.ShapeDtypeStruct((num_tiles, 8, 128), jnp.float32),
        grid=(num_tiles,),
        in_specs=[
            pl.BlockSpec((tn, c), lambda i: (i, 0)),   # weak   (wire dtype)
            pl.BlockSpec((tn, c), lambda i: (i, 0)),   # strong (wire dtype)
            pl.BlockSpec((tn, c), lambda i: (i, 0)),   # label  (wire dtype)
            pl.BlockSpec((tn, 1), lambda i: (i, 0)),   # y_label (int32 column)
        ],
        out_specs=pl.BlockSpec((1, 8, 128), lambda i: (i, 0, 0)),
        compiler_params=pltpu.CompilerParams(
            dimension_semantics=("parallel",),
            vmem_limit_bytes=int(budget)),
        cost_estimate=cost,
    )(weak, strong, label, y2d)      # NOTE: no f32 up-cast in the wrapper

    # Tiny final reduction in plain JAX (lets the grid axis stay "parallel").
    sums = jnp.sum(partials, axis=0)           # (8, 128)
    loss_s = sums[0, 0] / n
    mask_mean = sums[1, 0] / n
    ce_u = sums[2, 0] / n
    return loss_s + lambda_u * (ce_u * mask_mean)


def craig_loss_ref(weak, strong, label, y_label,
                   threshold=THRESHOLD, lambda_u=LAMBDA_U):
    # pure-JAX reference mirroring the PyTorch forward
    loss_s = jnp.mean(
        jax.nn.logsumexp(label.astype(jnp.float32), axis=-1)
        - jnp.take_along_axis(label.astype(jnp.float32),
                              y_label[:, None], axis=-1)[:, 0])
    pseudo = jax.nn.sigmoid(weak.astype(jnp.float32))
    max_probs = jnp.max(pseudo, axis=-1)
    max_idx = jnp.argmax(pseudo, axis=-1)
    mask = (max_probs >= threshold).astype(jnp.float32)
    ce_u = jnp.mean(
        jax.nn.logsumexp(strong.astype(jnp.float32), axis=-1)
        - jnp.take_along_axis(strong.astype(jnp.float32),
                              max_idx[:, None], axis=-1)[:, 0])
    loss_u = ce_u * jnp.mean(mask)
    return loss_s + lambda_u * loss_u


if __name__ == "__main__":
    # Small, deterministic test. N is deliberately NOT a multiple of the row
    # tile the auto-sizer picks (N=20 -> two 16-row tiles, last one padded),
    # exercising both the pipeline and the padded-tile masking path.
    N, C = 20, 128
    key = jax.random.PRNGKey(0)
    k1, k2, k3, k4 = jax.random.split(key, 4)

    # Alternate row scales so the confidence mask has both 0s and 1s.
    scale = jnp.where(jnp.arange(N) % 2 == 0, 4.0, 0.5)[:, None]
    weak = scale * jax.random.normal(k1, (N, C), dtype=jnp.float32)
    strong = jax.random.normal(k2, (N, C), dtype=jnp.float32)
    label = jax.random.normal(k3, (N, C), dtype=jnp.float32)
    y_label = jax.random.randint(k4, (N,), 0, C, dtype=jnp.int32)

    # Multi-tile (>=2 tiles, padded last tile) path.
    out = jax.block_until_ready(craig_loss(weak, strong, label, y_label))
    ref = craig_loss_ref(weak, strong, label, y_label)
    assert jnp.allclose(out, ref, atol=1e-4, rtol=1e-4), (out, ref)

    # Single-tile path (n <= 8 -> tn == n, block == full array dims).
    out_small = jax.block_until_ready(
        craig_loss(weak[:6], strong[:6], label[:6], y_label[:6]))
    ref_small = craig_loss_ref(weak[:6], strong[:6], label[:6], y_label[:6])
    assert jnp.allclose(out_small, ref_small, atol=1e-4, rtol=1e-4), (
        out_small, ref_small)

    # bf16-on-the-wire path: inputs stay bf16 over HBM, f32 compute in-kernel.
    wb, sb, lb = (x.astype(jnp.bfloat16) for x in (weak, strong, label))
    out_bf = jax.block_until_ready(craig_loss(wb, sb, lb, y_label))
    ref_bf = craig_loss_ref(wb, sb, lb, y_label)
    assert jnp.allclose(out_bf, ref_bf, atol=5e-3, rtol=5e-3), (out_bf, ref_bf)

    print("KERNEL_OK")
</pallas_src>

<mosaic_0001>
module attributes {stable_mosaic.version = 11 : i64} {
  func.func @_craig_tile_kernel(%arg0: i32, %arg1: memref<16x128xf32, #tpu.memory_space<vmem>>, %arg2: memref<16x128xf32, #tpu.memory_space<vmem>>, %arg3: memref<16x128xf32, #tpu.memory_space<vmem>>, %arg4: memref<16x1xi32, #tpu.memory_space<vmem>>, %arg5: memref<1x8x128xf32, #tpu.memory_space<vmem>>) attributes {dimension_semantics = [#tpu.dimension_semantics<parallel>], iteration_bounds = array<i64: 2>, scalar_prefetch = 0 : i64, scratch_operands = 0 : i64, tpu.core_type = #tpu.core_type<tc>, window_params = [{transform_indices = @transform_0, window_bounds = array<i64: 16, 128>}, {transform_indices = @transform_1, window_bounds = array<i64: 16, 128>}, {transform_indices = @transform_2, window_bounds = array<i64: 16, 128>}, {transform_indices = @transform_3, window_bounds = array<i64: 16, 1>}, {transform_indices = @transform_4, window_bounds = array<i64: 1, 8, 128>}]} {
    %c16_i32 = arith.constant 16 : i32
    %0 = arith.muli %arg0, %c16_i32 : i32
    %1 = tpu.iota {dimensions = array<i32: 0>} : vector<16x1xi32>
    %2 = vector.broadcast %0 : i32 to vector<16x1xi32>
    %3 = arith.addi %2, %1 : vector<16x1xi32>
    %c20_i32 = arith.constant 20 : i32
    %4 = vector.broadcast %c20_i32 : i32 to vector<16x1xi32>
    %5 = arith.cmpi slt, %3, %4 : vector<16x1xi32>
    %6 = tpu.iota {dimensions = array<i32: 1>} : vector<16x128xi32>
    %c0 = arith.constant 0 : index
    %c0_0 = arith.constant 0 : index
    %7 = vector.load %arg3[%c0, %c0_0] : memref<16x128xf32, #tpu.memory_space<vmem>>, vector<16x128xf32>
    %cst = arith.constant dense<0xFF800000> : vector<16xf32>
    %8 = vector.multi_reduction <maximumf>, %7, %cst [1] : vector<16x128xf32> to vector<16xf32>
    %9 = vector.shape_cast %8 : vector<16xf32> to vector<16x1xf32>
    %10 = vector.broadcast %9 : vector<16x1xf32> to vector<16x128xf32>
    %11 = arith.subf %7, %10 : vector<16x128xf32>
    %12 = math.exp %11 : vector<16x128xf32>
    %cst_1 = arith.constant dense<0.000000e+00> : vector<16xf32>
    %13 = vector.multi_reduction <add>, %12, %cst_1 [1] : vector<16x128xf32> to vector<16xf32>
    %14 = vector.shape_cast %13 : vector<16xf32> to vector<16x1xf32>
    %15 = math.log %14 : vector<16x1xf32>
    %16 = arith.addf %9, %15 : vector<16x1xf32>
    %c0_2 = arith.constant 0 : index
    %c0_3 = arith.constant 0 : index
    %17 = vector.load %arg4[%c0_2, %c0_3] : memref<16x1xi32, #tpu.memory_space<vmem>>, vector<16x1xi32>
    %18 = vector.broadcast %17 : vector<16x1xi32> to vector<16x128xi32>
    %19 = arith.cmpi eq, %6, %18 : vector<16x128xi32>
    %cst_4 = arith.constant 0.000000e+00 : f32
    %20 = vector.broadcast %cst_4 : f32 to vector<16x128xf32>
    %21 = arith.select %19, %7, %20 : vector<16x128xi1>, vector<16x128xf32>
    %cst_5 = arith.constant dense<0.000000e+00> : vector<16xf32>
    %22 = vector.multi_reduction <add>, %21, %cst_5 [1] : vector<16x128xf32> to vector<16xf32>
    %23 = vector.shape_cast %22 : vector<16xf32> to vector<16x1xf32>
    %24 = arith.subf %16, %23 : vector<16x1xf32>
    %cst_6 = arith.constant 0.000000e+00 : f32
    %25 = vector.broadcast %cst_6 : f32 to vector<16x1xf32>
    %26 = arith.select %5, %24, %25 : vector<16x1xi1>, vector<16x1xf32>
    %27 = vector.shape_cast %26 : vector<16x1xf32> to vector<1x16x1xf32>
    %cst_7 = arith.constant dense<0.000000e+00> : vector<1xf32>
    %28 = vector.multi_reduction <add>, %27, %cst_7 [1, 2] : vector<1x16x1xf32> to vector<1xf32>
    %29 = vector.shape_cast %28 : vector<1xf32> to vector<1x1x1xf32>
    %30 = vector.extract %29[0, 0, 0] : f32 from vector<1x1x1xf32>
    %c0_8 = arith.constant 0 : index
    %c0_9 = arith.constant 0 : index
    %31 = vector.load %arg1[%c0_8, %c0_9] : memref<16x128xf32, #tpu.memory_space<vmem>>, vector<16x128xf32>
    %cst_10 = arith.constant dense<0xFF800000> : vector<16xf32>
    %32 = vector.multi_reduction <maximumf>, %31, %cst_10 [1] : vector<16x128xf32> to vector<16xf32>
    %33 = vector.shape_cast %32 : vector<16xf32> to vector<16x1xf32>
    %34 = vector.broadcast %33 : vector<16x1xf32> to vector<16x128xf32>
    %35 = arith.cmpf oeq, %31, %34 : vector<16x128xf32>
    %c128_i32 = arith.constant 128 : i32
    %36 = vector.broadcast %c128_i32 : i32 to vector<16x128xi32>
    %37 = arith.select %35, %6, %36 : vector<16x128xi1>, vector<16x128xi32>
    %cst_11 = arith.constant dense<2147483647> : vector<16xi32>
    %38 = vector.multi_reduction <minsi>, %37, %cst_11 [1] : vector<16x128xi32> to vector<16xi32>
    %39 = vector.shape_cast %38 : vector<16xi32> to vector<16x1xi32>
    %cst_12 = arith.constant 2.94443893 : f32
    %40 = vector.broadcast %cst_12 : f32 to vector<16x1xf32>
    %41 = arith.cmpf oge, %33, %40 : vector<16x1xf32>
    %42 = arith.extui %41 : vector<16x1xi1> to vector<16x1xi32>
    %43 = arith.sitofp %42 : vector<16x1xi32> to vector<16x1xf32>
    %cst_13 = arith.constant 0.000000e+00 : f32
    %44 = vector.broadcast %cst_13 : f32 to vector<16x1xf32>
    %45 = arith.select %5, %43, %44 : vector<16x1xi1>, vector<16x1xf32>
    %46 = vector.shape_cast %45 : vector<16x1xf32> to vector<1x16x1xf32>
    %cst_14 = arith.constant dense<0.000000e+00> : vector<1xf32>
    %47 = vector.multi_reduction <add>, %46, %cst_14 [1, 2] : vector<1x16x1xf32> to vector<1xf32>
    %48 = vector.shape_cast %47 : vector<1xf32> to vector<1x1x1xf32>
    %49 = vector.extract %48[0, 0, 0] : f32 from vector<1x1x1xf32>
    %c0_15 = arith.constant 0 : index
    %c0_16 = arith.constant 0 : index
    %50 = vector.load %arg2[%c0_15, %c0_16] : memref<16x128xf32, #tpu.memory_space<vmem>>, vector<16x128xf32>
    %cst_17 = arith.constant dense<0xFF800000> : vector<16xf32>
    %51 = vector.multi_reduction <maximumf>, %50, %cst_17 [1] : vector<16x128xf32> to vector<16xf32>
    %52 = vector.shape_cast %51 : vector<16xf32> to vector<16x1xf32>
    %53 = vector.broadcast %52 : vector<16x1xf32> to vector<16x128xf32>
    %54 = arith.subf %50, %53 : vector<16x128xf32>
    %55 = math.exp %54 : vector<16x128xf32>
    %cst_18 = arith.constant dense<0.000000e+00> : vector<16xf32>
    %56 = vector.multi_reduction <add>, %55, %cst_18 [1] : vector<16x128xf32> to vector<16xf32>
    %57 = vector.shape_cast %56 : vector<16xf32> to vector<16x1xf32>
    %58 = math.log %57 : vector<16x1xf32>
    %59 = arith.addf %52, %58 : vector<16x1xf32>
    %60 = vector.broadcast %39 : vector<16x1xi32> to vector<16x128xi32>
    %61 = arith.cmpi eq, %6, %60 : vector<16x128xi32>
    %cst_19 = arith.constant 0.000000e+00 : f32
    %62 = vector.broadcast %cst_19 : f32 to vector<16x128xf32>
    %63 = arith.select %61, %50, %62 : vector<16x128xi1>, vector<16x128xf32>
    %cst_20 = arith.constant dense<0.000000e+00> : vector<16xf32>
    %64 = vector.multi_reduction <add>, %63, %cst_20 [1] : vector<16x128xf32> to vector<16xf32>
    %65 = vector.shape_cast %64 : vector<16xf32> to vector<16x1xf32>
    %66 = arith.subf %59, %65 : vector<16x1xf32>
    %cst_21 = arith.constant 0.000000e+00 : f32
    %67 = vector.broadcast %cst_21 : f32 to vector<16x1xf32>
    %68 = arith.select %5, %66, %67 : vector<16x1xi1>, vector<16x1xf32>
    %69 = vector.shape_cast %68 : vector<16x1xf32> to vector<1x16x1xf32>
    %cst_22 = arith.constant dense<0.000000e+00> : vector<1xf32>
    %70 = vector.multi_reduction <add>, %69, %cst_22 [1, 2] : vector<1x16x1xf32> to vector<1xf32>
    %71 = vector.shape_cast %70 : vector<1xf32> to vector<1x1x1xf32>
    %72 = vector.extract %71[0, 0, 0] : f32 from vector<1x1x1xf32>
    %73 = tpu.iota {dimensions = array<i32: 0>} : vector<8x128xi32>
    %c0_i32 = arith.constant 0 : i32
    %74 = vector.broadcast %c0_i32 : i32 to vector<8x128xi32>
    %75 = arith.cmpi eq, %73, %74 : vector<8x128xi32>
    %c1_i32 = arith.constant 1 : i32
    %76 = vector.broadcast %c1_i32 : i32 to vector<8x128xi32>
    %77 = arith.cmpi eq, %73, %76 : vector<8x128xi32>
    %c2_i32 = arith.constant 2 : i32
    %78 = vector.broadcast %c2_i32 : i32 to vector<8x128xi32>
    %79 = arith.cmpi eq, %73, %78 : vector<8x128xi32>
    %cst_23 = arith.constant 0.000000e+00 : f32
    %80 = vector.broadcast %72 : f32 to vector<8x128xf32>
    %81 = vector.broadcast %cst_23 : f32 to vector<8x128xf32>
    %82 = arith.select %79, %80, %81 : vector<8x128xi1>, vector<8x128xf32>
    %83 = vector.broadcast %49 : f32 to vector<8x128xf32>
    %84 = arith.select %77, %83, %82 : vector<8x128xi1>, vector<8x128xf32>
    %85 = vector.broadcast %30 : f32 to vector<8x128xf32>
    %86 = arith.select %75, %85, %84 : vector<8x128xi1>, vector<8x128xf32>
    %c0_24 = arith.constant 0 : index
    %c0_25 = arith.constant 0 : index
    %c0_26 = arith.constant 0 : index
    %87 = vector.load %arg5[%c0_24, %c0_25, %c0_26] : memref<1x8x128xf32, #tpu.memory_space<vmem>>, vector<1x8x128xf32>
    %88 = vector.shape_cast %87 : vector<1x8x128xf32> to vector<8x128xf32>
    %89 = vector.shape_cast %86 : vector<8x128xf32> to vector<1x8x128xf32>
    tpu.vector_store %arg5[%c0_24, %c0_25, %c0_26], %89 {strides = array<i32>} : memref<1x8x128xf32, #tpu.memory_space<vmem>>, vector<1x8x128xf32>,
    return
  }
  func.func @transform_0(%arg0: i32) -> (i32, i32) {
    %c0_i32 = arith.constant 0 : i32
    %c0_i32_0 = arith.constant 0 : i32
    return %arg0, %c0_i32 : i32, i32
  }
  func.func @transform_1(%arg0: i32) -> (i32, i32) {
    %c0_i32 = arith.constant 0 : i32
    %c0_i32_0 = arith.constant 0 : i32
    return %arg0, %c0_i32 : i32, i32
  }
  func.func @transform_2(%arg0: i32) -> (i32, i32) {
    %c0_i32 = arith.constant 0 : i32
    %c0_i32_0 = arith.constant 0 : i32
    return %arg0, %c0_i32 : i32, i32
  }
  func.func @transform_3(%arg0: i32) -> (i32, i32) {
    %c0_i32 = arith.constant 0 : i32
    %c0_i32_0 = arith.constant 0 : i32
    return %arg0, %c0_i32 : i32, i32
  }
  func.func @transform_4(%arg0: i32) -> (i32, i32, i32) {
    %c0_i32 = arith.constant 0 : i32
    %c0_i32_0 = arith.constant 0 : i32
    %c0_i32_1 = arith.constant 0 : i32
    return %arg0, %c0_i32, %c0_i32_0 : i32, i32, i32
  }
}

</mosaic_0001>

<bundles_post_ra>
// kernel: tpu_custom_call.1
= control target key start
LH: loop header
LB: loop body
LE: loop exit
PB: predicated region body
PF: predicated region fallthrough
CT: control target
= control target key end

     0   :  { %9 = vsyncpa [#allocation3], 0  ;;  %s1229_s0 = inlined_call_operand.vmem [shape: f32[20,128], index: 0, kind: input, shape index: {}]   ;;  %s1230_s1 = inlined_call_operand.hbm [shape: f32[20,128], index: 1, kind: input, shape index: {}]   ;;  %s1231_s2 = inlined_call_operand.hbm [shape: f32[20,128], index: 2, kind: input, shape index: {}]   ;;  %s1232_s3 = inlined_call_operand.vmem [shape: s32[20,1], index: 3, kind: input, shape index: {}]   ;;  %s1233_s4 = inlined_call_operand.hbm [shape: f32[2,8,128], index: 4, kind: output, shape index: {}]  }
   0x1   :  { %11 = vsyncpa [#allocation3 + $0x1], 0 }
   0x2   :  { %12 = vsyncpa [#allocation6], 0 }
   0x3   :  { %14 = vsyncpa [#allocation6 + $0x1], 0 }
   0x4   :  { %15 = vsyncpa [#allocation4], 0 }
   0x5   :  { %17 = vsyncpa [#allocation4 + $0x1], 0  ;;  %s934_s15 = smov 0   ;;  %s936_s16 = smov 0  }
   0x6   :  { %s938_s17 = smov 0   ;;  %s940_s18 = smov 0  }
   0x7 LB: > { %s955_s19 = sadd.s32 4294967295, %s898_s18   ;;  %s673_s20 = sadd.s32 4294967294, %s898_s18   ;;  %s898_s18 = sphi %s940_s18, %s1246_s18   ;;  %s894_s17 = sphi %s938_s17, %s1245_s17   ;;  %s890_s16 = sphi %s936_s16, %s1244_s16   ;;  %s886_s15 = sphi %s934_s15, %s1243_s15  }
   0x8   : > { %s959_s21 = sadd.s32 1, %s898_s18   ;;  %s56_s22 = sadd.s32 1, %s894_s17 }
   0x9   : > { %s53_s23 = ssub.s32 %s898_s18, %s959_s21  ;;  %p63_p0 = scmp.ne.s32.totalorder %s894_s17, %s890_s16 }
   0xa   : > { %p54_p1 = scmp.eq.s32.totalorder %s53_s23, 0  ;;  %p64_p2 = scmp.eq.s32.totalorder %s898_s18, 0 }
   0xb   : > { %p69_p3 = scmp.ne.s32.totalorder %s890_s16, %s886_s15  ;;  %p70_p4 = scmp.eq.s32.totalorder %s955_s19, 0 }
   0xc   : > { %s971_s24 = scalar_select %p54_p1, %s894_s17, %s56_s22  }
   0xd   : > { %p973_p5 = por %p64_p2, %p63_p0  ;;  %p977_p6 = por %p70_p4, %p69_p3 }
   0xe   : > { %p145_p7 = scmp.eq.s32.totalorder %s955_s19, 1  ;;  %p151_p8 = scmp.eq.s32.totalorder %s673_s20, 1 }
   0xf   : > { %p1234_p11 = scmp.ge.s32.totalorder %s898_s18, 2 }
  0x10   : > { %p982_p9 = por %p145_p7, %p63_p0  ;;  %p986_p10 = por %p151_p8, %p69_p3 }
  0x11   : > { %167 = sbr.rel (%p1234_p11) target bundleno = 86 (0x56), region = 16 }
  0x12   : > { %s1238_s27 = scalar_select %p982_p9, 1, 0 }
  0x13   : > { %s1239_s28 = scalar_select %p986_p10, 1, 0 }
  0x16   : > { %187 = sbr.rel (!%p973_p5) target bundleno = 54 (0x36), region = 24  ;;  %s188_s29 = sand.u32 (%p973_p5), 1, %s894_s17  }
  0x17   : > { %s677_s30 = sshll.u32 (%p973_p5), %s898_s18, 1  ;;  %s676_s5 = sshll.u32 (%p973_p5), %s188_s29, 4 }
  0x18   : > { %s194_s6 = ssub.s32 (%p973_p5), 3, %s677_s30  ;;  %s1000_s9 = scalar_lea.sflag (%p973_p5), [#allocation3], %s188_s29 }
  0x19   : > { %p195_p12 = scmp.lt.s32.totalorder (%p973_p5), %s194_s6, 2  ;;  %s192_s10 = scalar_lea.vmem (%p973_p5), [#allocation2], %s676_s5 }
  0x1b   : > { %s1248_s6 = smov (!%p195_p12, %s194_s6), 2 }
  0x1c   : > { %s997_s7 = sshll.u32 %s1248_s6, 7 }
  0x1d   : > { %s199_s8 = ssub.s32 256, %s997_s7 }
  0x1e   : > { %200 = vsyncadd %s1000_s9, %s199_s8  ;;  %p679_p13 = scmp.ne.s32.totalorder %s997_s7, 0  ;;  %s705_s11 = sshll.u32 %s898_s18, 8 }
  0x1f   : > { %s1008_s14 = scalar_lea.hbm %s1230_s1, %s705_s11  ;;  %s205_s20 = sshll.u32 %s192_s10, 4  ;;  %s1010_s20 = int_to_ptr.vmem [resolvable:$true] %s205_s20 }
  0x20   : > { %s778_s22 = scalar_lea.hbm %s1008_s14, %s997_s7  ;;  %s782_s30 = scalar_lea.hbm %s1230_s1, 384 }
  0x21   : > { %p779_p0 = scmp.ne.s32.totalorder %s1008_s14, %s778_s22  ;;  %p783_p3 = scmp.lt.s32.totalorder %s1008_s14, %s1230_s1 }
  0x22   : > { %p784_p4 = scmp.lt.s32.totalorder %s782_s30, %s778_s22 }
  0x23   : > { %p780_p1 = pnand %p779_p0, %p679_p13 }
  0x24   : > { %p785_p7 = por %p784_p4, %p783_p3 }
  0x25   : > { %p781_p2 = pneg %p780_p1 }
  0x27   : > { %p786_p8 = pnand %p785_p7, %p781_p2 }
  0x29   : > { %789 = shalt.err (!%p786_p8)
}
  0x2a   : > { %s790_s8 = scalar_lea.vmem %s1010_s20, %s997_s7  ;;  %s900_s10 = smov [#allocation2]  }
  0x2b   : > { %p791_p12 = scmp.ne.s32.totalorder %s1010_s20, %s790_s8  ;;  %s794_s11 = sshll.u32 %s900_s10, 4  ;;  %s795_s11 = int_to_ptr.vmem [resolvable:$false] %s794_s11 }
  0x2c   : > { %s796_s12 = scalar_lea.vmem %s795_s11, 512  ;;  %p797_p11 = scmp.lt.s32.totalorder %s1010_s20, %s795_s11 }
  0x2d   : > { %p792_p0 = pnand %p791_p12, %p679_p13  ;;  %p798_p10 = scmp.lt.s32.totalorder %s796_s12, %s790_s8 }
  0x2f   : > { %p793_p1 = pneg %p792_p0  ;;  %p799_p9 = por %p798_p10, %p797_p11 }
  0x31   : > { %p800_p3 = pnand %p799_p9, %p793_p1 }
  0x33   : > { %803 = shalt.err (!%p800_p3)
}
  0x34   : > { %s901_s13 = smov 128   ;;  %s902_s22 = smov 8  }
  0x35   : > { %211 = dma.hbm_to_vmem [thread:$0]  (%p679_p13), %s1008_s14, %s997_s7, %s1010_s20, %s1000_s9, %s901_s13, %s901_s13, %s902_s22  }
  0x36 PF: > { %214 = sbr.rel (!%p973_p5) target bundleno = 86 (0x56), region = 28  ;;  %s215_s23 = sand.u32 (%p973_p5), 1, %s894_s17  }
  0x37   : > { %s684_s29 = sshll.u32 (%p973_p5), %s898_s18, 1  ;;  %s683_s30 = sshll.u32 (%p973_p5), %s215_s23, 4 }
  0x38   : > { %s221_s5 = ssub.s32 (%p973_p5), 3, %s684_s29  ;;  %s1043_s10 = scalar_lea.sflag (%p973_p5), [#allocation6], %s215_s23 }
  0x39   : > { %p222_p9 = scmp.lt.s32.totalorder (%p973_p5), %s221_s5, 2  ;;  %s219_s7 = scalar_lea.vmem (%p973_p5), [#allocation5], %s683_s30 }
  0x3b   : > { %s1250_s5 = smov (!%p222_p9, %s221_s5), 2 }
  0x3c   : > { %s1040_s6 = sshll.u32 %s1250_s5, 7 }
  0x3d   : > { %s226_s8 = ssub.s32 256, %s1040_s6 }
  0x3e   : > { %227 = vsyncadd %s1043_s10, %s226_s8  ;;  %p686_p5 = scmp.ne.s32.totalorder %s1040_s6, 0  ;;  %s706_s25 = sshll.u32 %s898_s18, 8 }
  0x3f   : > { %s1051_s20 = scalar_lea.hbm %s1231_s2, %s706_s25  ;;  %s232_s11 = sshll.u32 %s219_s7, 4  ;;  %s1053_s11 = int_to_ptr.vmem [resolvable:$true] %s232_s11 }
  0x40   : > { %s804_s12 = scalar_lea.hbm %s1051_s20, %s1040_s6  ;;  %s808_s23 = scalar_lea.hbm %s1231_s2, 384 }
  0x41   : > { %p805_p10 = scmp.ne.s32.totalorder %s1051_s20, %s804_s12  ;;  %p809_p2 = scmp.lt.s32.totalorder %s1051_s20, %s1231_s2 }
  0x42   : > { %p810_p4 = scmp.lt.s32.totalorder %s808_s23, %s804_s12 }
  0x43   : > { %p806_p11 = pnand %p805_p10, %p686_p5 }
  0x44   : > { %p811_p7 = por %p810_p4, %p809_p2 }
  0x45   : > { %p807_p13 = pneg %p806_p11 }
  0x47   : > { %p812_p8 = pnand %p811_p7, %p807_p13 }
  0x49   : > { %815 = shalt.err (!%p812_p8)
}
  0x4a   : > { %s816_s5 = scalar_lea.vmem %s1053_s11, %s1040_s6  ;;  %s903_s8 = smov [#allocation5]  }
  0x4b   : > { %p817_p12 = scmp.ne.s32.totalorder %s1053_s11, %s816_s5  ;;  %s820_s7 = sshll.u32 %s903_s8, 4  ;;  %s821_s7 = int_to_ptr.vmem [resolvable:$false] %s820_s7 }
  0x4c   : > { %s822_s25 = scalar_lea.vmem %s821_s7, 512  ;;  %p823_p3 = scmp.lt.s32.totalorder %s1053_s11, %s821_s7 }
  0x4d   : > { %p818_p0 = pnand %p817_p12, %p686_p5  ;;  %p824_p9 = scmp.lt.s32.totalorder %s822_s25, %s816_s5 }
  0x4f   : > { %p819_p1 = pneg %p818_p0  ;;  %p825_p10 = por %p824_p9, %p823_p3 }
  0x51   : > { %p826_p11 = pnand %p825_p10, %p819_p1 }
  0x53   : > { %829 = shalt.err (!%p826_p11)
}
  0x54   : > { %s904_s9 = smov 128   ;;  %s905_s14 = smov 8  }
  0x55   : > { %238 = dma.hbm_to_vmem [thread:$0]  (%p686_p5), %s1051_s20, %s1040_s6, %s1053_s11, %s1043_s10, %s904_s9, %s904_s9, %s905_s14  }
  0x56 PF: > { %p690_p13 = scmp.ge.s32.totalorder %s898_s18, 1  ;;  %p257_p2 = scmp.lt.s32.totalorder %s898_s18, 3 }
  0x58   : > { %p258_p4 = pnand %p690_p13, %p257_p2 }
  0x59   : > { %s1082_s12 = sand.u32 (!%p258_p4), 1, %s890_s16  }
  0x5a   : > { %261 = sbr.rel (%p258_p4) target bundleno = 910 (0x38e), region = 36  ;;  %s691_s13 = sshll.u32 (!%p258_p4), %s1082_s12, 4 }
  0x5b   : > { %s264_s22 = scalar_lea.sflag (!%p258_p4), [#allocation3], %s1082_s12  ;;  %s1086_s23 = scalar_lea.vmem (!%p258_p4), [#allocation2], %s691_s13 }
  0x5f   : > { %873 = dma.done.wait (%p977_p6), %s264_s22, 256  }
  0x60   : > { %875 = vsyncadd (%p977_p6), %s264_s22, 4294967040  ;;  %s273_s6 = scalar_lea.sflag [#allocation6], %s1082_s12  ;;  %s1093_s10 = scalar_lea.vmem [#allocation5], %s691_s13 }
  0x61   : > { %877 = dma.done.wait (%p977_p6), %s273_s6, 256  }
  0x62   : > { %879 = vsyncadd (%p977_p6), %s273_s6, 4294967040  ;;  %s694_s20 = sshll.u32 %s955_s19, 1  ;;  %v1109_v2 = vld [vmem:[%s1093_s10] sm:$0xff]  ;;  %v363_v4 = vlaneseq  ;;  %s698_s26 = sshll.u32 %s955_s19, 4  ;;  %v906_v13 = vmov 0.0   ;;  %vm415_vm4 = vcmask 7168  }
  0x63   : > { %p329_p5 = scmp.lt.s32.totalorder %s694_s20, 2  ;;  %v1113_v3 = vld [vmem:[%s1086_s23] sm:$0xff]  ;;  %v366_v6 = vstv %s698_s26  ;;  %v374_v27 = vld [vmem:[%s1093_s10 + $0x8] sm:$0xff]  ;;  %v907_v29 = vmov 0   ;;  %s693_s9 = sshll.u32 %s1082_s12, 3 }
  0x64   : > { %v1117_v5 = vshrl.u32 %v363_v4, 7  ;;  %v1120_v8 = vand.u32 127, %v363_v4  ;;  %v1141_v28 = vld [vmem:[%s1086_s23 + $0x8] sm:$0xff]  ;;  %761 = vset.pattern.permute.xlu1 %v907_v29  ;;  %760 = vset.pattern.permute.xlu0 %v907_v29  ;;  %s702_s22 = sshll.u32 %s955_s19, 7  ;;  %s323_s6 = scalar_lea.vmem [#allocation7], %s693_s9 }
  0x65   : > { %s1252_s20 = smov (!%p329_p5, %s694_s20), 2  ;;  %s556_s10 = sshll.u32 %s323_s6, 4  ;;  %s557_s10 = int_to_ptr.vmem [resolvable:$true] %s556_s10 }
  0x66   : > { %s695_s11 = sshll.u32 %s1252_s20, 3  ;;  %v365_v7 = vadd.s32 8, %v1117_v5  ;;  %v1123_v9 = vadd.s32 %v366_v6, %v1117_v5  ;;  %vm534_vm13 = vcmp.eq.s32.totalorder %v1117_v5, 2  ;;  %vm533_vm14 = vcmp.eq.s32.totalorder %v1117_v5, 1  ;;  %s1192_s29 = scalar_lea.hbm %s1233_s4, %s702_s22 }
  0x67   : > { %s332_s5 = scalar_lea.vmem %s1229_s0, %s695_s11  ;;  %s356_s25 = scalar_lea.vmem %s1232_s3, %s695_s11  ;;  %vm532_vm15 = vcmp.eq.s32.totalorder %v1117_v5, 0 }
  0x68   : > { %v428_v0 = vld [vmem:[%s332_s5] sm:$0xff]  ;;  %v429_v1 = vld [vmem:[%s332_s5 + $0x8] sm:$0xff]  ;;  %v1125_v11 = vadd.s32 %v366_v6, %v365_v7  ;;  %vm369_vm2 = vcmp.lt.s32.totalorder %v1123_v9, 20  ;;  %s543_s19 = scalar_lea.sflag [#allocation4], %s1082_s12  ;;  %s830_s30 = scalar_lea.vmem %s557_s10, 128 }
  0x69   : > { %430 = vmax.xlane.f32.xlu0 %v428_v0  ;;  %v396_v38 = vld [vmem:[%s356_s25 + $0x8] sm:$0xff]  ;;  %v395_v39 = vld [vmem:[%s356_s25] sm:$0xff]  ;;  %p831_p6 = scmp.ne.s32.totalorder %s557_s10, %s830_s30  ;;  %p1240_p7 = scmp.ne.s32.totalorder %s1238_s27, 0 }
  0x6a   : > { %vm370_vm3 = vcmp.lt.s32.totalorder %v1125_v11, 20  ;;  %s908_s5 = smov [#allocation7]  }
  0x6b   : > { %p832_p8 = pnand %p831_p6, %p1240_p7  ;;  %s834_s26 = sshll.u32 %s908_s5, 4  ;;  %s835_s26 = int_to_ptr.vmem [resolvable:$false] %s834_s26 }
  0x6c   : > { %s836_s8 = scalar_lea.vmem %s835_s26, 256  ;;  %p837_p0 = scmp.lt.s32.totalorder %s557_s10, %s835_s26 }
  0x6d   : > { %432 = vmax.xlane.f32.xlu0 %v429_v1  ;;  %p833_p12 = pneg %p832_p8  ;;  %p838_p1 = scmp.lt.s32.totalorder %s836_s8, %s830_s30 }
  0x6f   : > { %p839_p3 = por %p838_p1, %p837_p0 }
  0x71   : > { %375 = vmax.xlane.f32.xlu0 %v1109_v2  ;;  %p840_p9 = pnand %p839_p3, %p833_p12 }
  0x75   : > { %488 = vmax.xlane.f32.xlu0 %v1113_v3 }
  0xf2   : > { %v431_v10 = vpop.xlane.xlu0 %430 }
  0xf3   : > { %vm434_vm0 = vcmp.eq.f32.partialorder %v428_v0, %v431_v10  ;;  %vm466_vm1 = vcmp.ge.f32.partialorder %v431_v10, 2.944439 }
  0xf4   : > { %v436_v12 = vsel %vm434_vm0, %v1120_v8, 128  ;;  %v699_v14 = vsel %vm466_vm1, 1.0, %v906_v13 }
  0xf5   : > { %v439_v15 = vshra.s32 %v436_v12, 16  ;;  %v472_v18 = vsel %vm369_vm2, %v699_v14, 0.0  ;;  %v438_v30 = vand.u32 65535, %v436_v12 }
  0xf6   : > { %v433_v16 = vpop.xlane.xlu0 %432  ;;  %v474_v23 = vsel %vm415_vm4, %v472_v18, 0.0 }
  0xf7   : > { %vm435_vm5 = vcmp.eq.f32.partialorder %v429_v1, %v433_v16  ;;  %vm467_vm6 = vcmp.ge.f32.partialorder %v433_v16, 2.944439  ;;  %v441_v17 = vcvt.s32.f32 %v439_v15  ;;  %v440_v32 = vcvt.s32.f32 %v438_v30 }
  0xf8   : > { %v437_v19 = vsel %vm435_vm5, %v1120_v8, 128  ;;  %v700_v20 = vsel %vm467_vm6, 1.0, %v906_v13 }
  0xf9   : > { %442 = vmin.xlane.f32.xlu1 %v441_v17  ;;  %v453_v21 = vshra.s32 %v437_v19, 16  ;;  %v473_v22 = vsel %vm370_vm3, %v700_v20, 0.0  ;;  %v452_v33 = vand.u32 65535, %v437_v19 }
  0xfa   : > { %v475_v24 = vsel %vm415_vm4, %v473_v22, 0.0  ;;  %v376_v41 = vpop.xlane.xlu0 %375 }
  0xfb   : > { %v455_v25 = vcvt.s32.f32 %v453_v21  ;;  %v1137_v26 = vadd.f32 %v475_v24, %v474_v23  ;;  %v454_v36 = vcvt.s32.f32 %v452_v33  ;;  %v379_v44 = vsub.f32 %v1109_v2, %v376_v41 }
  0xfd   : > { %456 = vmin.xlane.f32.xlu1 %v455_v25  ;;  %v381_v46 = vmul.f32 1.442695, %v379_v44 }
  0xfe   : > { %v1153_v45 = vpop.xlane.xlu0 %488 }
  0xff   : > { %v492_v47 = vsub.f32 %v1113_v3, %v1153_v45 }
 0x101   : > { %377 = vmax.xlane.f32.xlu1 %v374_v27  ;;  %v494_v49 = vmul.f32 1.442695, %v492_v47 }
 0x105   : > { %490 = vmax.xlane.f32.xlu1 %v1141_v28 }
 0x182   : > { %v443_v31 = vpop.xlane.xlu1 %442 }
 0x183   : > { %vm444_vm7 = vcmp.eq.f32.partialorder %v441_v17, %v443_v31  ;;  %v449_v58 = vcvt.f32.s32 %v443_v31 }
 0x184   : > { %v445_v34 = vsel %vm444_vm7, %v440_v32, inf }
 0x185   : > { %446 = vmin.xlane.f32.xlu0 %v445_v34  ;;  %v450_v62 = vshll.u32 %v449_v58, 16 }
 0x186   : > { %v457_v35 = vpop.xlane.xlu1 %456 }
 0x187   : > { %vm458_vm8 = vcmp.eq.f32.partialorder %v455_v25, %v457_v35  ;;  %v463_v63 = vcvt.f32.s32 %v457_v35 }
 0x188   : > { %v459_v37 = vsel %vm458_vm8, %v454_v36, inf }
 0x189   : > { %460 = vmin.xlane.f32.xlu1 %v459_v37  ;;  %v464_v7 = vshll.u32 %v463_v63, 16 }
 0x18a   : > { %v1149_v40 = vpop.xlane.xlu1 %377 }
 0x18b   : > { %v380_v42 = vsub.f32 %v374_v27, %v1149_v40 }
 0x18d   : > { %v383_v43 = vmul.f32 1.442695, %v380_v42 }
 0x18e   : > { %v1157_v48 = vpop.xlane.xlu1 %490 }
 0x18f   : > { %762 = vpow2.f32 %v383_v43  ;;  %v493_v50 = vsub.f32 %v1141_v28, %v1157_v48 }
 0x190   : > { %764 = vpow2.f32 %v381_v46 }
 0x191   : > { %766 = vpow2.f32 %v494_v49  ;;  %v496_v51 = vmul.f32 1.442695, %v493_v50 }
 0x193   : > { %768 = vpow2.f32 %v496_v51 }
 0x19a   : > { %401 = vperm.xlu1 %761, %v396_v38  }
 0x19b   : > { %398 = vperm.xlu0 %760, %v395_v39  }
 0x19c   : > { %v763_v52 = vpop.eup %762 }
 0x19d   : > { %v765_v53 = vpop.eup %764 }
 0x19e   : > { %v767_v54 = vpop.eup %766 }
 0x1a0   : > { %v769_v55 = vpop.eup %768 }
 0x1ba   : > { %387 = vadd.xlane.f32.xlu0 %v763_v52 }
 0x1be   : > { %385 = vadd.xlane.f32.xlu1 %v765_v53 }
 0x1c2   : > { %498 = vadd.xlane.f32.xlu1 %v767_v54 }
 0x1c6   : > { %500 = vadd.xlane.f32.xlu1 %v769_v55 }
 0x20e   : > { %v447_v56 = vpop.xlane.xlu0 %446 }
 0x20f   : > { %v448_v59 = vcvt.f32.s32 %v447_v56 }
 0x211   : > { %v451_v1 = vadd.s32 %v450_v62, %v448_v59 }
 0x212   : > { %v461_v57 = vpop.xlane.xlu1 %460 }
 0x213   : > { %v462_v4 = vcvt.f32.s32 %v461_v57  ;;  %vm508_vm11 = vcmp.eq.s32.totalorder %v1120_v8, %v451_v1 }
 0x214   : > { %v510_v12 = vsel %vm508_vm11, %v1113_v3, 0.0 }
 0x215   : > { %v465_v10 = vadd.s32 %v464_v7, %v462_v4 }
 0x216   : > { %v399_v60 = vpop.permute.xlu0 %398  ;;  %v402_v61 = vpop.permute.xlu1 %401 }
 0x217   : > { %vm403_vm9 = vcmp.eq.s32.totalorder %v1120_v8, %v399_v60  ;;  %vm404_vm10 = vcmp.eq.s32.totalorder %v1120_v8, %v402_v61  ;;  %vm509_vm12 = vcmp.eq.s32.totalorder %v1120_v8, %v465_v10 }
 0x218   : > { %v405_v0 = vsel %vm403_vm9, %v1109_v2, 0.0  ;;  %v406_v6 = vsel %vm404_vm10, %v374_v27, 0.0  ;;  %v511_v13 = vsel %vm509_vm12, %v1141_v28, 0.0 }
 0x219   : > { %407 = vadd.xlane.f32.xlu1 %v405_v0 }
 0x21d   : > { %409 = vadd.xlane.f32.xlu1 %v406_v6 }
 0x221   : > { %512 = vadd.xlane.f32.xlu1 %v510_v12 }
 0x225   : > { %514 = vadd.xlane.f32.xlu1 %v511_v13 }
 0x229   : > { %477 = vadd.xlane.f32.xlu1 %v1137_v26 }
 0x243   : > { %v388_v14 = vpop.xlane.xlu0 %387 }
 0x247   : > { %v386_v2 = vpop.xlane.xlu1 %385 }
 0x248   : > { %770 = vlog2.f32 %v386_v2 }
 0x249   : > { %772 = vlog2.f32 %v388_v14 }
 0x24b   : > { %v499_v15 = vpop.xlane.xlu1 %498 }
 0x24c   : > { %774 = vlog2.f32 %v499_v15 }
 0x24f   : > { %v501_v16 = vpop.xlane.xlu1 %500 }
 0x250   : > { %776 = vlog2.f32 %v501_v16 }
 0x255   : > { %v771_v17 = vpop.eup %770 }
 0x256   : > { %v390_v18 = vmul.f32 0.6931472, %v771_v17  ;;  %v773_v19 = vpop.eup %772 }
 0x257   : > { %v392_v3 = vmul.f32 0.6931472, %v773_v19 }
 0x258   : > { %v393_v20 = vadd.f32 %v390_v18, %v376_v41 }
 0x259   : > { %v775_v21 = vpop.eup %774  ;;  %v394_v24 = vadd.f32 %v392_v3, %v1149_v40 }
 0x25a   : > { %v503_v23 = vmul.f32 0.6931472, %v775_v21 }
 0x25c   : > { %v506_v31 = vadd.f32 %v503_v23, %v1153_v45 }
 0x25d   : > { %v777_v25 = vpop.eup %776 }
 0x25e   : > { %v505_v29 = vmul.f32 0.6931472, %v777_v25 }
 0x260   : > { %v507_v37 = vadd.f32 %v505_v29, %v1157_v48 }
 0x2a2   : > { %v408_v8 = vpop.xlane.xlu1 %407 }
 0x2a3   : > { %v411_v22 = vsub.f32 %v393_v20, %v408_v8 }
 0x2a5   : > { %v413_v27 = vsel %vm369_vm2, %v411_v22, 0.0 }
 0x2a6   : > { %v410_v26 = vpop.xlane.xlu1 %409  ;;  %v416_v33 = vsel %vm415_vm4, %v413_v27, 0.0 }
 0x2a7   : > { %v412_v28 = vsub.f32 %v394_v24, %v410_v26 }
 0x2a9   : > { %v414_v30 = vsel %vm370_vm3, %v412_v28, 0.0 }
 0x2aa   : > { %v513_v32 = vpop.xlane.xlu1 %512  ;;  %v417_v34 = vsel %vm415_vm4, %v414_v30, 0.0 }
 0x2ab   : > { %v516_v35 = vsub.f32 %v506_v31, %v513_v32  ;;  %v418_v36 = vadd.f32 %v417_v34, %v416_v33 }
 0x2ad   : > { %419 = vadd.xlane.f32.xlu0 %v418_v36  ;;  %v518_v39 = vsel %vm369_vm2, %v516_v35, 0.0 }
 0x2ae   : > { %v515_v38 = vpop.xlane.xlu1 %514  ;;  %v520_v42 = vsel %vm415_vm4, %v518_v39, 0.0 }
 0x2af   : > { %v517_v40 = vsub.f32 %v507_v37, %v515_v38 }
 0x2b1   : > { %v519_v41 = vsel %vm370_vm3, %v517_v40, 0.0 }
 0x2b2   : > { %v521_v43 = vsel %vm415_vm4, %v519_v41, 0.0  ;;  %v478_v45 = vpop.xlane.xlu1 %477 }
 0x2b3   : > { %v522_v44 = vadd.f32 %v521_v43, %v520_v42  ;;  %v479_v46 = vrot.slane %v478_v45, 4 }
 0x2b5   : > { %523 = vadd.xlane.f32.xlu0 %v522_v44  ;;  %v480_v47 = vadd.f32 %v479_v46, %v478_v45 }
 0x2b7   : > { %v481_v49 = vrot.slane %v480_v47, 2 }
 0x2b9   : > { %v482_v52 = vadd.f32 %v481_v49, %v480_v47 }
 0x2bb   : > { %v483_v11 = vrot.slane %v482_v52, 1 }
 0x2bd   : > { %v484_v59 = vadd.f32 %v483_v11, %v482_v52 }
 0x336   : > { %v420_v50 = vpop.xlane.xlu0 %419 }
 0x337   : > { %v421_v48 = vrot.slane %v420_v50, 4 }
 0x339   : > { %v422_v51 = vadd.f32 %v421_v48, %v420_v50 }
 0x33b   : > { %v423_v9 = vrot.slane %v422_v51, 2 }
 0x33d   : > { %v424_v53 = vadd.f32 %v423_v9, %v422_v51 }
 0x33e   : > { %v524_v54 = vpop.xlane.xlu0 %523 }
 0x33f   : > { %v525_v55 = vrot.slane %v524_v54, 4  ;;  %v425_v56 = vrot.slane %v424_v53, 1 }
 0x341   : > { %v526_v57 = vadd.f32 %v525_v55, %v524_v54  ;;  %v426_v58 = vadd.f32 %v425_v56, %v424_v53 }
 0x343   : > { %v527_v60 = vrot.slane %v526_v57, 2  ;;  %707 = vpush %v426_v58 }
 0x344   : > { %709 = vpush %v484_v59 }
 0x345   : > { %v528_v61 = vadd.f32 %v527_v60, %v526_v57 }
 0x347   : > { %v529_v62 = vrot.slane %v528_v61, 1 }
 0x349   : > { %v530_v63 = vadd.f32 %v529_v62, %v528_v61 }
 0x34b   : > { %711 = vpush %v530_v63 }
 0x374   : > { %s708_s14 = spop %707 }
 0x375   : > { %s710_s13 = spop %709  ;;  %v539_v6 = vstv %s708_s14 }
 0x376   : > { %v537_v1 = vstv %s710_s13 }
 0x37c   : > { %s712_s23 = spop %711 }
 0x37d   : > { %v535_v0 = vstv %s712_s23 }
 0x37e   : > { %v536_v4 = vsel %vm534_vm13, %v535_v0, 0.0 }
 0x37f   : > { %v538_v7 = vsel %vm533_vm14, %v537_v1, %v536_v4 }
 0x380   : > { %v540_v10 = vsel %vm532_vm15, %v539_v6, %v538_v7 }
 0x381   : > { %541 = vst [vmem:[%s323_s6] sm:$0xff] %v540_v10 }
 0x382   : > { %843 = shalt.err (!%p840_p9)
}
 0x383   : > { %s844_s7 = scalar_lea.hbm %s1192_s29, 128  ;;  %s848_s9 = scalar_lea.hbm %s1233_s4, 256 }
 0x384   : > { %p845_p10 = scmp.ne.s32.totalorder %s1192_s29, %s844_s7  ;;  %p849_p2 = scmp.lt.s32.totalorder %s1192_s29, %s1233_s4 }
 0x385   : > { %p850_p4 = scmp.lt.s32.totalorder %s848_s9, %s844_s7 }
 0x386   : > { %p846_p11 = pnand %p845_p10, %p1240_p7 }
 0x387   : > { %p851_p5 = por %p850_p4, %p849_p2 }
 0x388   : > { %p847_p13 = pneg %p846_p11 }
 0x38a   : > { %p852_p6 = pnand %p851_p5, %p847_p13 }
 0x38c   : > { %855 = shalt.err (!%p852_p6)
}
 0x38d   : > { %715 = dma.vmem_to_hbm [thread:$0]  (%p1240_p7), %s557_s10, 128, %s1192_s29, %s543_s19  }
 0x38e PF: > { %s568_s22 = sand.u32 1, %s886_s15   ;;  %p1241_p8 = scmp.ne.s32.totalorder %s1239_s28, 0 }
 0x38f   : > { %p1242_p12 = scmp.ge.s32.totalorder %s898_s18, 2  ;;  %s569_s23 = scalar_lea.sflag [#allocation4], %s568_s22 }
 0x391   : > { %p718_p0 = pnand %p1242_p12, %p1241_p8 }
 0x393   : > { %p719_p1 = pneg %p718_p0 }
 0x395   : > { %881 = dma.done.wait (%p719_p1), %s569_s23, 128  }
 0x396   : > { %883 = vsyncadd (%p719_p1), %s569_s23, 4294967168  ;;  %p20_p3 = scmp.ge.s32.totalorder %s959_s21, 4   ;;  %s1243_s15 = smov %s890_s16 }
 0x397   : > { %s1244_s16 = smov %s894_s17  ;;  %s1245_s17 = smov %s971_s24 }
 0x398   : > { %s1246_s18 = smov %s959_s21  ;;  %22 = sbr.rel (!%p20_p3) target bundleno = 7 (0x7), region = 100 }
 0x39d   :  { %574 = vsyncpa [#allocation3], 1 }
 0x39e   :  { %576 = vsyncpa [#allocation3 + $0x1], 1 }
 0x39f   :  { %577 = vsyncpa [#allocation6], 1 }
 0x3a0   :  { %579 = vsyncpa [#allocation6 + $0x1], 1 }
 0x3a1   :  { %580 = vsyncpa [#allocation4], 1 }
 0x3a2   :  { %582 = vsyncpa [#allocation4 + $0x1], 1 }

</bundles_post_ra>
